<compile_context>
chip_gen: v7x
topology: tpu7x:2x2x1
jax: 0.10.0
libtpu: 0.0.40
codegen_flags: <defaults>
</compile_context>

<pallas_src>
import jax
import jax.numpy as jnp
from jax.experimental import pallas as pl
from jax.experimental.pallas import tpu as pltpu


def _round_up(x, m):
    return (x + m - 1) // m * m


def _cdiv(a, b):
    return (a + b - 1) // b


def _probe_buffered():
    """Does this JAX version support per-BlockSpec buffer counts?"""
    try:
        pl.BlockSpec((8, 128), lambda i: (i, 0), pipeline_mode=pl.Buffered(1))
        return True
    except Exception:
        return False


_HAS_BUFFERED = _probe_buffered()


# ----------------------------------------------------------------------------
# Kernel: lane-dense linear head   o = feat @ W + b   (one row tile per step)
# ----------------------------------------------------------------------------
def _linear_head_kernel(feat_ref, w_ref, b_ref, o_ref):
    # feat_ref: (tb, H)  w_ref: (H, Np)  b_ref: (1, Np)  o_ref: (tb, Np)
    acc = jnp.dot(feat_ref[...], w_ref[...], preferred_element_type=jnp.float32)
    o_ref[...] = (acc + b_ref[...]).astype(o_ref.dtype)


class ChemTAR:
    """Pallas TPU implementation of Chem_TAR: out = x[:, 0] @ W + b."""

    def __init__(self, w, b, *, weight_dtype=jnp.bfloat16, block_rows=1024,
                 min_pallas_bytes=256 * 1024):
        # w: (hidden, n_out)  (transpose of torch nn.Linear.weight), b: (n_out,)
        self.hidden, self.n_out = w.shape
        self.block_rows = int(block_rows)
        self.min_pallas_bytes = int(min_pallas_bytes)

        # Originals for the tiny-batch XLA fallback.
        self.w = jnp.asarray(w)
        self.b = jnp.asarray(b)

        # Cached, lane-padded parameters (built exactly once; zero columns do
        # not perturb the real outputs, which are sliced back after the call).
        Np = _round_up(self.n_out, 128)
        self.n_out_padded = Np
        self.w_padded = (
            jnp.zeros((self.hidden, Np), weight_dtype)
            .at[:, : self.n_out].set(jnp.asarray(w).astype(weight_dtype))
        )
        self.b_padded = (
            jnp.zeros((1, Np), jnp.float32)
            .at[0, : self.n_out].set(jnp.asarray(b).astype(jnp.float32))
        )

    # ------------------------------------------------------------------ tiles
    def _pick_row_tile(self, batch, in_itemsize, out_itemsize):
        H, Np = self.hidden, self.n_out_padded
        b8 = _round_up(max(batch, 1), 8)
        tb = min(_round_up(self.block_rows, 8), b8)

        # v7x has two TensorCores: give the "parallel" batch axis >= 2 steps
        # for decently sized batches so both cores get work.
        if b8 >= 1024 and _cdiv(b8, tb) < 2:
            tb = _round_up(_cdiv(b8, 2), 8)

        # Conservative VMEM budget, safe across v5e/v6e (128 MiB physical) and
        # v7x (64 MiB physical, 32 MiB scoped default): double-buffered feature
        # and output tiles plus the resident weight/bias.
        budget = 24 * 1024 * 1024
        w_bytes = ((1 if _HAS_BUFFERED else 2)
                   * H * Np * jnp.dtype(self.w_padded.dtype).itemsize)
        b_bytes = Np * 4

        def vmem_need(t):
            return 2 * t * H * in_itemsize + 2 * t * Np * out_itemsize + w_bytes + b_bytes

        while tb > 8 and vmem_need(tb) > budget:
            tb = max(8, _round_up(tb // 2, 8))
        return tb

    # ---------------------------------------------------------------- forward
    def __call__(self, x, *, use_pallas=None):
        assert x.ndim == 3 and x.shape[2] == self.hidden, "expected (B, S, hidden)"
        B, S, H = x.shape
        in_itemsize = jnp.dtype(x.dtype).itemsize

        if use_pallas is None:
            # Below ~a few hundred KiB of features the fixed pallas_call / DMA
            # setup overhead exceeds a fused XLA dot.
            use_pallas = B * H * in_itemsize >= self.min_pallas_bytes
        if not use_pallas:
            feat = x[:, 0, :].astype(jnp.float32)
            return (feat @ self.w.astype(jnp.float32)
                    + self.b.astype(jnp.float32)).astype(x.dtype)

        Np = self.n_out_padded
        out_dtype = x.dtype
        out_itemsize = jnp.dtype(out_dtype).itemsize
        tb = self._pick_row_tile(B, in_itemsize, out_itemsize)
        grid = (_cdiv(B, tb),)

        # Fold the CLS slice into the BlockSpec: view x as (B, S*H) (free,
        # row-major merge) and read column-block 0 (= token 0's H features) of
        # each row tile directly from HBM.  Only falls back to one wrapper
        # slice when H is not lane aligned.
        if H % 128 == 0:
            feat_src = x.reshape(B, S * H)
        else:
            # TODO(synk): non-lane-aligned hidden sizes keep one wrapper-side
            # CLS slice (still only B*H elements, never B*S*H).
            feat_src = x[:, 0, :]

        # Advisory cost estimate with the TRUE (un-padded) problem sizes.
        cost = pl.CostEstimate(
            flops=2 * B * H * self.n_out,
            transcendentals=0,
            bytes_accessed=(
                B * H * in_itemsize
                + H * self.n_out * jnp.dtype(self.w_padded.dtype).itemsize
                + self.n_out * 4
                + B * self.n_out * out_itemsize
            ),
        )

        def call_pallas(single_buffer_params):
            def resident_spec(shape):
                # Constant index_map: weight/bias stay resident in VMEM; a
                # single buffer is enough when the runtime supports it.
                if single_buffer_params:
                    return pl.BlockSpec(shape, lambda i: (0, 0),
                                        pipeline_mode=pl.Buffered(1))
                return pl.BlockSpec(shape, lambda i: (0, 0))

            return pl.pallas_call(
                _linear_head_kernel,
                grid=grid,
                in_specs=[
                    pl.BlockSpec((tb, H), lambda i: (i, 0)),   # CLS row tile
                    resident_spec((H, Np)),                    # resident weight
                    resident_spec((1, Np)),                    # resident bias
                ],
                out_specs=pl.BlockSpec((tb, Np), lambda i: (i, 0)),
                out_shape=jax.ShapeDtypeStruct((B, Np), out_dtype),
                compiler_params=pltpu.CompilerParams(
                    dimension_semantics=("parallel",),
                    vmem_limit_bytes=32 * 1024 * 1024,  # v5e scoped default is 16 MiB
                ),
                cost_estimate=cost,
            )(feat_src, self.w_padded, self.b_padded)

        if _HAS_BUFFERED:
            try:
                out = call_pallas(True)
            except Exception:
                # Lowering without Buffered(1) support: retry double-buffered.
                out = call_pallas(False)
        else:
            out = call_pallas(False)

        return out[:, : self.n_out] if Np != self.n_out else out


# ----------------------------------------------------------------------------
# Demo / self-check
# ----------------------------------------------------------------------------
if __name__ == "__main__":
    B, S, H, N_OUT = 16, 8, 128, 1
    key = jax.random.PRNGKey(0)
    kx, kw, kb = jax.random.split(key, 3)

    # x plays the role of BERT encoder output (B, S, H); weights stored as
    # (in, out) = transpose of torch nn.Linear's (out, in) layout (same math).
    x = jax.random.normal(kx, (B, S, H), dtype=jnp.float32)
    w = (0.02 * jax.random.normal(kw, (H, N_OUT))).astype(jnp.float32)
    b = (0.02 * jax.random.normal(kb, (N_OUT,))).astype(jnp.float32)

    model = ChemTAR(w, b)
    out = model(x, use_pallas=True)      # force the Pallas path at demo size
    out = jax.block_until_ready(out)

    ref = x[:, 0, :] @ w + b[None, :]
    assert out.shape == (B, N_OUT)
    # bf16-cached weights + MXU default precision => modest tolerance.
    assert bool(jnp.allclose(out.astype(jnp.float32), ref, atol=2e-2, rtol=2e-2))
    print("KERNEL_OK")
</pallas_src>

<mosaic_0001>
module attributes {stable_mosaic.version = 11 : i64} {
  func.func @_linear_head_kernel(%arg0: i32, %arg1: memref<16x128xf32, #tpu.memory_space<vmem>>, %arg2: memref<128x128xbf16, #tpu.memory_space<vmem>>, %arg3: memref<1x128xf32, #tpu.memory_space<vmem>>, %arg4: memref<16x128xf32, #tpu.memory_space<vmem>>) attributes {dimension_semantics = [#tpu.dimension_semantics<parallel>], iteration_bounds = array<i64: 1>, scalar_prefetch = 0 : i64, scratch_operands = 0 : i64, tpu.core_type = #tpu.core_type<tc>, window_params = [{transform_indices = @transform_0, window_bounds = array<i64: 16, 128>}, {pipeline_mode = #tpu.pipeline_mode<synchronous>, transform_indices = @transform_1, window_bounds = array<i64: 128, 128>}, {pipeline_mode = #tpu.pipeline_mode<synchronous>, transform_indices = @transform_2, window_bounds = array<i64: 1, 128>}, {transform_indices = @transform_3, window_bounds = array<i64: 16, 128>}]} {
    %c0 = arith.constant 0 : index
    %c0_0 = arith.constant 0 : index
    %0 = vector.load %arg1[%c0, %c0_0] : memref<16x128xf32, #tpu.memory_space<vmem>>, vector<16x128xf32>
    %c0_1 = arith.constant 0 : index
    %c0_2 = arith.constant 0 : index
    %1 = vector.load %arg2[%c0_1, %c0_2] : memref<128x128xbf16, #tpu.memory_space<vmem>>, vector<128x128xbf16>
    %cst = arith.constant dense<0.000000e+00> : vector<16x128xf32>
    %2 = tpu.matmul %0, %1, %cst {dimension_numbers = #tpu.dot_dimension_numbers<[1], [0], [0], [1], [0, 0, 1, 1], [], []>} : vector<16x128xf32>, vector<128x128xbf16>, vector<16x128xf32> -> vector<16x128xf32>
    %c0_3 = arith.constant 0 : index
    %c0_4 = arith.constant 0 : index
    %3 = vector.load %arg3[%c0_3, %c0_4] : memref<1x128xf32, #tpu.memory_space<vmem>>, vector<1x128xf32>
    %4 = vector.broadcast %3 : vector<1x128xf32> to vector<16x128xf32>
    %5 = arith.addf %2, %4 : vector<16x128xf32>
    %c0_5 = arith.constant 0 : index
    %c0_6 = arith.constant 0 : index
    %6 = vector.load %arg4[%c0_5, %c0_6] : memref<16x128xf32, #tpu.memory_space<vmem>>, vector<16x128xf32>
    tpu.vector_store %arg4[%c0_5, %c0_6], %5 {strides = array<i32>} : memref<16x128xf32, #tpu.memory_space<vmem>>, vector<16x128xf32>,
    return
  }
  func.func @transform_0(%arg0: i32) -> (i32, i32) {
    %c0_i32 = arith.constant 0 : i32
    %c0_i32_0 = arith.constant 0 : i32
    return %arg0, %c0_i32 : i32, i32
  }
  func.func @transform_1(%arg0: i32) -> (i32, i32) {
    %c0_i32 = arith.constant 0 : i32
    %c0_i32_0 = arith.constant 0 : i32
    %c0_i32_1 = arith.constant 0 : i32
    return %c0_i32, %c0_i32_0 : i32, i32
  }
  func.func @transform_2(%arg0: i32) -> (i32, i32) {
    %c0_i32 = arith.constant 0 : i32
    %c0_i32_0 = arith.constant 0 : i32
    %c0_i32_1 = arith.constant 0 : i32
    return %c0_i32, %c0_i32_0 : i32, i32
  }
  func.func @transform_3(%arg0: i32) -> (i32, i32) {
    %c0_i32 = arith.constant 0 : i32
    %c0_i32_0 = arith.constant 0 : i32
    return %arg0, %c0_i32 : i32, i32
  }
}

module attributes {stable_mosaic.version = 11 : i64} {
  func.func @_linear_head_kernel(%arg0: i32, %arg1: memref<16x128xf32, #tpu.memory_space<vmem>>, %arg2: memref<128x128xbf16, #tpu.memory_space<vmem>>, %arg3: memref<1x128xf32, #tpu.memory_space<vmem>>, %arg4: memref<16x128xf32, #tpu.memory_space<vmem>>) attributes {dimension_semantics = [#tpu.dimension_semantics<parallel>], iteration_bounds = array<i64: 1>, scalar_prefetch = 0 : i64, scratch_operands = 0 : i64, tpu.core_type = #tpu.core_type<tc>, window_params = [{transform_indices = @transform_0, window_bounds = array<i64: 16, 128>}, {pipeline_mode = #tpu.pipeline_mode<synchronous>, transform_indices = @transform_1, window_bounds = array<i64: 128, 128>}, {pipeline_mode = #tpu.pipeline_mode<synchronous>, transform_indices = @transform_2, window_bounds = array<i64: 1, 128>}, {transform_indices = @transform_3, window_bounds = array<i64: 16, 128>}]} {
    %c0 = arith.constant 0 : index
    %c0_0 = arith.constant 0 : index
    %0 = vector.load %arg1[%c0, %c0_0] : memref<16x128xf32, #tpu.memory_space<vmem>>, vector<16x128xf32>
    %c0_1 = arith.constant 0 : index
    %c0_2 = arith.constant 0 : index
    %1 = vector.load %arg2[%c0_1, %c0_2] : memref<128x128xbf16, #tpu.memory_space<vmem>>, vector<128x128xbf16>
    %cst = arith.constant dense<0.000000e+00> : vector<16x128xf32>
    %2 = tpu.matmul %0, %1, %cst {dimension_numbers = #tpu.dot_dimension_numbers<[1], [0], [0], [1], [0, 0, 1, 1], [], []>} : vector<16x128xf32>, vector<128x128xbf16>, vector<16x128xf32> -> vector<16x128xf32>
    %c0_3 = arith.constant 0 : index
    %c0_4 = arith.constant 0 : index
    %3 = vector.load %arg3[%c0_3, %c0_4] : memref<1x128xf32, #tpu.memory_space<vmem>>, vector<1x128xf32>
    %4 = vector.broadcast %3 : vector<1x128xf32> to vector<16x128xf32>
    %5 = arith.addf %2, %4 : vector<16x128xf32>
    %c0_5 = arith.constant 0 : index
    %c0_6 = arith.constant 0 : index
    %6 = vector.load %arg4[%c0_5, %c0_6] : memref<16x128xf32, #tpu.memory_space<vmem>>, vector<16x128xf32>
    tpu.vector_store %arg4[%c0_5, %c0_6], %5 {strides = array<i32>} : memref<16x128xf32, #tpu.memory_space<vmem>>, vector<16x128xf32>,
    return
  }
  func.func @transform_0(%arg0: i32) -> (i32, i32) {
    %c0_i32 = arith.constant 0 : i32
    %c0_i32_0 = arith.constant 0 : i32
    return %arg0, %c0_i32 : i32, i32
  }
  func.func @transform_1(%arg0: i32) -> (i32, i32) {
    %c0_i32 = arith.constant 0 : i32
    %c0_i32_0 = arith.constant 0 : i32
    %c0_i32_1 = arith.constant 0 : i32
    return %c0_i32, %c0_i32_0 : i32, i32
  }
  func.func @transform_2(%arg0: i32) -> (i32, i32) {
    %c0_i32 = arith.constant 0 : i32
    %c0_i32_0 = arith.constant 0 : i32
    %c0_i32_1 = arith.constant 0 : i32
    return %c0_i32, %c0_i32_0 : i32, i32
  }
  func.func @transform_3(%arg0: i32) -> (i32, i32) {
    %c0_i32 = arith.constant 0 : i32
    %c0_i32_0 = arith.constant 0 : i32
    return %arg0, %c0_i32 : i32, i32
  }
}

</mosaic_0001>

<bundles_post_ra>
// kernel: tpu_custom_call.1
= control target key start
LH: loop header
LB: loop body
LE: loop exit
PB: predicated region body
PF: predicated region fallthrough
CT: control target
= control target key end

     0   :  { %8 = vsyncpa [#allocation3], 0  ;;  %s381_s0 = inlined_call_operand.hbm [shape: f32[16,1024], index: 0, kind: input, shape index: {}]   ;;  %s382_s1 = inlined_call_operand.hbm [shape: bf16[128,128], index: 1, kind: input, shape index: {}]   ;;  %s383_s2 = inlined_call_operand.vmem [shape: f32[1,128], index: 2, kind: input, shape index: {}]   ;;  %s384_s3 = inlined_call_operand.hbm [shape: f32[16,128], index: 3, kind: output, shape index: {}]  }
   0x1   :  { %9 = vsyncpa [#allocation6], 0 }
   0x2   :  { %10 = vsyncpa [#allocation4], 0  ;;  %s306_s12 = smov [#allocation2]   ;;  %s234_s16 = scalar_lea.hbm %s381_s0, 256 }
   0x3   :  { %s16_s13 = sshll.u32 %s306_s12, 4  ;;  %p235_p0 = scmp.ne.s32.totalorder %s381_s0, %s234_s16  ;;  %s17_s13 = int_to_ptr.vmem [resolvable:$true] %s16_s13 }
   0x4   :  { %s236_s21 = scalar_lea.hbm %s381_s0, 2048  ;;  %p238_p2 = scmp.lt.u32.totalorder %s234_s16, %s381_s0 }
   0x5   :  { %p237_p1 = scmp.lt.u32.totalorder %s236_s21, %s234_s16 }
   0x7   :  { %p239_p3 = por %p238_p2, %p237_p1 }
   0x9   :  { %p240_p4 = pnand %p239_p3, %p235_p0 }
   0xb   :  { %243 = shalt.err (!%p240_p4)
}
   0xc   :  { %s244_s24 = scalar_lea.vmem %s17_s13, 256  ;;  %p249_p6 = scmp.lt.s32.totalorder %s17_s13, %s17_s13 }
   0xd   :  { %p245_p5 = scmp.ne.s32.totalorder %s17_s13, %s244_s24  ;;  %p250_p7 = scmp.lt.s32.totalorder %s244_s24, %s244_s24 }
   0xf   :  { %p251_p8 = por %p250_p7, %p249_p6 }
  0x11   :  { %p252_p9 = pnand %p251_p8, %p245_p5 }
  0x13   :  { %255 = shalt.err (!%p252_p9)
}
  0x14   :  { %s307_s25 = smov 1024   ;;  %s308_s26 = smov 128  }
  0x15   :  { %s309_s27 = smov 8   ;;  %s310_s30 = smov [#allocation5]  }
  0x16   :  { %22 = dma.hbm_to_vmem [thread:$0]  %s381_s0, 256, %s17_s13, [#allocation3], %s307_s25, %s308_s26, %s309_s27  }
  0x17   :  { %s28_s4 = sshll.u32 %s310_s30, 4  ;;  %s256_s7 = scalar_lea.hbm %s382_s1, 1024  ;;  %s29_s4 = int_to_ptr.vmem [resolvable:$true] %s28_s4 }
  0x18   :  { %p257_p10 = scmp.ne.s32.totalorder %s382_s1, %s256_s7  ;;  %p260_p11 = scmp.lt.u32.totalorder %s256_s7, %s382_s1 }
  0x1a   :  { %p262_p12 = pnand %p260_p11, %p257_p10 }
  0x1c   :  { %265 = shalt.err (!%p262_p12)
}
  0x1d   :  { %s266_s12 = scalar_lea.vmem %s29_s4, 1024  ;;  %p271_p0 = scmp.lt.s32.totalorder %s29_s4, %s29_s4 }
  0x1e   :  { %p267_p13 = scmp.ne.s32.totalorder %s29_s4, %s266_s12  ;;  %p272_p1 = scmp.lt.s32.totalorder %s266_s12, %s266_s12 }
  0x20   :  { %p273_p2 = por %p272_p1, %p271_p0 }
  0x22   :  { %p274_p3 = pnand %p273_p2, %p267_p13 }
  0x24   :  { %277 = shalt.err (!%p274_p3)
}
  0x25   :  { %s311_s0 = smov 64   ;;  %s312_s13 = smov 4  }
  0x26   :  { %34 = dma.hbm_to_vmem [thread:$0]  %s382_s1, 1024, %s29_s4, [#allocation6], %s311_s0, %s311_s0, %s312_s13  }
  0x27   :  { %300 = dma.done.wait [#allocation3], 256  }
  0x28   :  { %301 = vsyncadd [#allocation3], 4294967040 }
  0x29   :  { %302 = dma.done.wait [#allocation6], 1024  }
  0x2a   :  { %303 = vsyncadd [#allocation6], 4294966272  ;;  %v226_v0 = vld [vmem:[#allocation5] sm:$0xff]   ;;  %v227_v1 = vld [vmem:[#allocation5 + $0x8] sm:$0xff]   ;;  %s313_s17 = smov [#allocation7]  }
  0x2b   :  { %199 = vmatprep.subr.bf16.mxu0 %v226_v0  ;;  %v228_v2 = vld [vmem:[#allocation5 + $0x10] sm:$0xff]   ;;  %v229_v3 = vld [vmem:[#allocation5 + $0x18] sm:$0xff]   ;;  %v230_v5 = vld [vmem:[#allocation5 + $0x20] sm:$0xff]   ;;  %s167_s18 = sshll.u32 %s313_s17, 4  ;;  %s168_s18 = int_to_ptr.vmem [resolvable:$true] %s167_s18 }
  0x2c   :  { %200 = vmatpush3.bf16.msra.mxu0 %v226_v0  ;;  %v44_v4 = vld [vmem:[#allocation2] sm:$0xff]  ;;  %v231_v6 = vld [vmem:[#allocation5 + $0x28] sm:$0xff]   ;;  %v233_v8 = vld [vmem:[#allocation5 + $0x38] sm:$0xff]   ;;  %s278_s19 = scalar_lea.vmem %s168_s18, 256  ;;  %p283_p5 = scmp.lt.s32.totalorder %s168_s18, %s168_s18 }
  0x2d   :  { %201 = vmatprep.subr.bf16.mxu0 %v227_v1  ;;  %215 = vmatprep.mubr.f32.mxu0 %v44_v4  ;;  %v232_v7 = vld [vmem:[#allocation5 + $0x30] sm:$0xff]   ;;  %v45_v9 = vld [vmem:[#allocation2 + $0x8] sm:$0xff]  ;;  %p279_p4 = scmp.ne.s32.totalorder %s168_s18, %s278_s19  ;;  %p284_p6 = scmp.lt.s32.totalorder %s278_s19, %s278_s19 }
  0x2e   :  { %v180_v10 = vld [vmem:[%s383_s2] ss:$0 sm:$0xff] }
  0x2f   :  { %p285_p7 = por %p284_p6, %p283_p5 }
  0x30   :  { %202 = vmatpush3.bf16.msra.mxu0 %v227_v1 }
  0x31   :  { %203 = vmatprep.subr.bf16.mxu0 %v228_v2  ;;  %p286_p8 = pnand %p285_p7, %p279_p4 }
  0x34   :  { %204 = vmatpush3.bf16.msra.mxu0 %v228_v2 }
  0x35   :  { %205 = vmatprep.subr.bf16.mxu0 %v229_v3 }
  0x38   :  { %206 = vmatpush3.bf16.msra.mxu0 %v229_v3 }
  0x39   :  { %207 = vmatprep.subr.bf16.mxu0 %v230_v5 }
  0x3c   :  { %208 = vmatpush3.bf16.msra.mxu0 %v230_v5 }
  0x3d   :  { %209 = vmatprep.subr.bf16.mxu0 %v231_v6 }
  0x40   :  { %210 = vmatpush3.bf16.msra.mxu0 %v231_v6 }
  0x41   :  { %211 = vmatprep.subr.bf16.mxu0 %v232_v7 }
  0x44   :  { %212 = vmatpush3.bf16.msra.mxu0 %v232_v7 }
  0x45   :  { %213 = vmatprep.subr.bf16.mxu0 %v233_v8 }
  0x48   :  { %214 = vmatpush3.bf16.msra.mxu0 %v233_v8 }
  0x4b   :  { %216 = vmatmul.mubr.f32.vlgmr.msra.gmra.mrb[0].mxu0 %v45_v9 }
 0x11e   :  { %v217_v11 = vpop.f32.mrb[0].mxu0 }
 0x11f   :  { %v157_v12 = vadd.f32 %v217_v11, %v180_v10  ;;  %v151_v13 = vpop.f32.mrb[1].mxu0 }
 0x120   :  { %v152_v14 = vadd.f32 %v180_v10, %v151_v13 }
 0x121   :  { %161 = vst [vmem:[#allocation7 + $0x8] sm:$0xff] %v157_v12 }
 0x122   :  { %160 = vst [vmem:[#allocation7] sm:$0xff] %v152_v14 }
 0x123   :  { %289 = shalt.err (!%p286_p8)
}
 0x124   :  { %s290_s2 = scalar_lea.hbm %s384_s3, 256 }
 0x125   :  { %p291_p9 = scmp.ne.s32.totalorder %s384_s3, %s290_s2  ;;  %p294_p10 = scmp.lt.u32.totalorder %s290_s2, %s384_s3 }
 0x127   :  { %p296_p11 = pnand %p294_p10, %p291_p9 }
 0x129   :  { %299 = shalt.err (!%p296_p11)
}
 0x12a   :  { %173 = dma.vmem_to_hbm [thread:$0]  %s168_s18, 256, %s384_s3, [#allocation4], %s308_s26, %s308_s26, %s309_s27  }
 0x12b   :  { %304 = dma.done.wait [#allocation4], 256  }
 0x12c   :  { %305 = vsyncadd [#allocation4], 4294967040 }
 0x12d   :  { %177 = vsyncpa [#allocation3], 1 }
 0x12e   :  { %178 = vsyncpa [#allocation6], 1 }
 0x12f   :  { %179 = vsyncpa [#allocation4], 1 }

// kernel: tpu_custom_call.1
= control target key start
LH: loop header
LB: loop body
LE: loop exit
PB: predicated region body
PF: predicated region fallthrough
CT: control target
= control target key end

     0   :  { %8 = vsyncpa [#allocation3], 0  ;;  %s381_s0 = inlined_call_operand.hbm [shape: f32[16,1024], index: 0, kind: input, shape index: {}]   ;;  %s382_s1 = inlined_call_operand.hbm [shape: bf16[128,128], index: 1, kind: input, shape index: {}]   ;;  %s383_s2 = inlined_call_operand.vmem [shape: f32[1,128], index: 2, kind: input, shape index: {}]   ;;  %s384_s3 = inlined_call_operand.hbm [shape: f32[16,128], index: 3, kind: output, shape index: {}]  }
   0x1   :  { %9 = vsyncpa [#allocation6], 0 }
   0x2   :  { %10 = vsyncpa [#allocation4], 0  ;;  %s306_s12 = smov [#allocation2]   ;;  %s234_s16 = scalar_lea.hbm %s381_s0, 256 }
   0x3   :  { %s16_s13 = sshll.u32 %s306_s12, 4  ;;  %p235_p0 = scmp.ne.s32.totalorder %s381_s0, %s234_s16  ;;  %s17_s13 = int_to_ptr.vmem [resolvable:$true] %s16_s13 }
   0x4   :  { %s236_s21 = scalar_lea.hbm %s381_s0, 2048  ;;  %p238_p2 = scmp.lt.u32.totalorder %s234_s16, %s381_s0 }
   0x5   :  { %p237_p1 = scmp.lt.u32.totalorder %s236_s21, %s234_s16 }
   0x7   :  { %p239_p3 = por %p238_p2, %p237_p1 }
   0x9   :  { %p240_p4 = pnand %p239_p3, %p235_p0 }
   0xb   :  { %243 = shalt.err (!%p240_p4)
}
   0xc   :  { %s244_s24 = scalar_lea.vmem %s17_s13, 256  ;;  %p249_p6 = scmp.lt.s32.totalorder %s17_s13, %s17_s13 }
   0xd   :  { %p245_p5 = scmp.ne.s32.totalorder %s17_s13, %s244_s24  ;;  %p250_p7 = scmp.lt.s32.totalorder %s244_s24, %s244_s24 }
   0xf   :  { %p251_p8 = por %p250_p7, %p249_p6 }
  0x11   :  { %p252_p9 = pnand %p251_p8, %p245_p5 }
  0x13   :  { %255 = shalt.err (!%p252_p9)
}
  0x14   :  { %s307_s25 = smov 1024   ;;  %s308_s26 = smov 128  }
  0x15   :  { %s309_s27 = smov 8   ;;  %s310_s30 = smov [#allocation5]  }
  0x16   :  { %22 = dma.hbm_to_vmem [thread:$0]  %s381_s0, 256, %s17_s13, [#allocation3], %s307_s25, %s308_s26, %s309_s27  }
  0x17   :  { %s28_s4 = sshll.u32 %s310_s30, 4  ;;  %s256_s7 = scalar_lea.hbm %s382_s1, 1024  ;;  %s29_s4 = int_to_ptr.vmem [resolvable:$true] %s28_s4 }
  0x18   :  { %p257_p10 = scmp.ne.s32.totalorder %s382_s1, %s256_s7  ;;  %p260_p11 = scmp.lt.u32.totalorder %s256_s7, %s382_s1 }
  0x1a   :  { %p262_p12 = pnand %p260_p11, %p257_p10 }
  0x1c   :  { %265 = shalt.err (!%p262_p12)
}
  0x1d   :  { %s266_s12 = scalar_lea.vmem %s29_s4, 1024  ;;  %p271_p0 = scmp.lt.s32.totalorder %s29_s4, %s29_s4 }
  0x1e   :  { %p267_p13 = scmp.ne.s32.totalorder %s29_s4, %s266_s12  ;;  %p272_p1 = scmp.lt.s32.totalorder %s266_s12, %s266_s12 }
  0x20   :  { %p273_p2 = por %p272_p1, %p271_p0 }
  0x22   :  { %p274_p3 = pnand %p273_p2, %p267_p13 }
  0x24   :  { %277 = shalt.err (!%p274_p3)
}
  0x25   :  { %s311_s0 = smov 64   ;;  %s312_s13 = smov 4  }
  0x26   :  { %34 = dma.hbm_to_vmem [thread:$0]  %s382_s1, 1024, %s29_s4, [#allocation6], %s311_s0, %s311_s0, %s312_s13  }
  0x27   :  { %300 = dma.done.wait [#allocation3], 256  }
  0x28   :  { %301 = vsyncadd [#allocation3], 4294967040 }
  0x29   :  { %302 = dma.done.wait [#allocation6], 1024  }
  0x2a   :  { %303 = vsyncadd [#allocation6], 4294966272  ;;  %v226_v0 = vld [vmem:[#allocation5] sm:$0xff]   ;;  %v227_v1 = vld [vmem:[#allocation5 + $0x8] sm:$0xff]   ;;  %s313_s17 = smov [#allocation7]  }
  0x2b   :  { %199 = vmatprep.subr.bf16.mxu0 %v226_v0  ;;  %v228_v2 = vld [vmem:[#allocation5 + $0x10] sm:$0xff]   ;;  %v229_v3 = vld [vmem:[#allocation5 + $0x18] sm:$0xff]   ;;  %v230_v5 = vld [vmem:[#allocation5 + $0x20] sm:$0xff]   ;;  %s167_s18 = sshll.u32 %s313_s17, 4  ;;  %s168_s18 = int_to_ptr.vmem [resolvable:$true] %s167_s18 }
  0x2c   :  { %200 = vmatpush3.bf16.msra.mxu0 %v226_v0  ;;  %v44_v4 = vld [vmem:[#allocation2] sm:$0xff]  ;;  %v231_v6 = vld [vmem:[#allocation5 + $0x28] sm:$0xff]   ;;  %v233_v8 = vld [vmem:[#allocation5 + $0x38] sm:$0xff]   ;;  %s278_s19 = scalar_lea.vmem %s168_s18, 256  ;;  %p283_p5 = scmp.lt.s32.totalorder %s168_s18, %s168_s18 }
  0x2d   :  { %201 = vmatprep.subr.bf16.mxu0 %v227_v1  ;;  %215 = vmatprep.mubr.f32.mxu0 %v44_v4  ;;  %v232_v7 = vld [vmem:[#allocation5 + $0x30] sm:$0xff]   ;;  %v45_v9 = vld [vmem:[#allocation2 + $0x8] sm:$0xff]  ;;  %p279_p4 = scmp.ne.s32.totalorder %s168_s18, %s278_s19  ;;  %p284_p6 = scmp.lt.s32.totalorder %s278_s19, %s278_s19 }
  0x2e   :  { %v180_v10 = vld [vmem:[%s383_s2] ss:$0 sm:$0xff] }
  0x2f   :  { %p285_p7 = por %p284_p6, %p283_p5 }
  0x30   :  { %202 = vmatpush3.bf16.msra.mxu0 %v227_v1 }
  0x31   :  { %203 = vmatprep.subr.bf16.mxu0 %v228_v2  ;;  %p286_p8 = pnand %p285_p7, %p279_p4 }
  0x34   :  { %204 = vmatpush3.bf16.msra.mxu0 %v228_v2 }
  0x35   :  { %205 = vmatprep.subr.bf16.mxu0 %v229_v3 }
  0x38   :  { %206 = vmatpush3.bf16.msra.mxu0 %v229_v3 }
  0x39   :  { %207 = vmatprep.subr.bf16.mxu0 %v230_v5 }
  0x3c   :  { %208 = vmatpush3.bf16.msra.mxu0 %v230_v5 }
  0x3d   :  { %209 = vmatprep.subr.bf16.mxu0 %v231_v6 }
  0x40   :  { %210 = vmatpush3.bf16.msra.mxu0 %v231_v6 }
  0x41   :  { %211 = vmatprep.subr.bf16.mxu0 %v232_v7 }
  0x44   :  { %212 = vmatpush3.bf16.msra.mxu0 %v232_v7 }
  0x45   :  { %213 = vmatprep.subr.bf16.mxu0 %v233_v8 }
  0x48   :  { %214 = vmatpush3.bf16.msra.mxu0 %v233_v8 }
  0x4b   :  { %216 = vmatmul.mubr.f32.vlgmr.msra.gmra.mrb[0].mxu0 %v45_v9 }
 0x11e   :  { %v217_v11 = vpop.f32.mrb[0].mxu0 }
 0x11f   :  { %v157_v12 = vadd.f32 %v217_v11, %v180_v10  ;;  %v151_v13 = vpop.f32.mrb[1].mxu0 }
 0x120   :  { %v152_v14 = vadd.f32 %v180_v10, %v151_v13 }
 0x121   :  { %161 = vst [vmem:[#allocation7 + $0x8] sm:$0xff] %v157_v12 }
 0x122   :  { %160 = vst [vmem:[#allocation7] sm:$0xff] %v152_v14 }
 0x123   :  { %289 = shalt.err (!%p286_p8)
}
 0x124   :  { %s290_s2 = scalar_lea.hbm %s384_s3, 256 }
 0x125   :  { %p291_p9 = scmp.ne.s32.totalorder %s384_s3, %s290_s2  ;;  %p294_p10 = scmp.lt.u32.totalorder %s290_s2, %s384_s3 }
 0x127   :  { %p296_p11 = pnand %p294_p10, %p291_p9 }
 0x129   :  { %299 = shalt.err (!%p296_p11)
}
 0x12a   :  { %173 = dma.vmem_to_hbm [thread:$0]  %s168_s18, 256, %s384_s3, [#allocation4], %s308_s26, %s308_s26, %s309_s27  }
 0x12b   :  { %304 = dma.done.wait [#allocation4], 256  }
 0x12c   :  { %305 = vsyncadd [#allocation4], 4294967040 }
 0x12d   :  { %177 = vsyncpa [#allocation3], 1 }
 0x12e   :  { %178 = vsyncpa [#allocation6], 1 }
 0x12f   :  { %179 = vsyncpa [#allocation4], 1 }

</bundles_post_ra>
